<compile_context>
chip_gen: v5e
topology: v5e:2x2
jax: 0.10.0
libtpu: 0.0.40
codegen_flags: <defaults>
</compile_context>

<pallas_src>
import functools
import math

import jax
import jax.numpy as jnp
from jax.experimental import pallas as pl
from jax.experimental.pallas import tpu as pltpu


def _round_up(x, m):
    return ((x + m - 1) // m) * m


# ---------------------------------------------------------------------------
# Kernel 1: tiled sequence-wide input projection (no sequential dependence).
#   gates_block = x_block @ W_x_packed   (one MXU GEMM per row-block).
# ---------------------------------------------------------------------------
def xproj_kernel(x_ref, w_ref, o_ref):
    o_ref[...] = jnp.dot(
        x_ref[...], w_ref[...], preferred_element_type=jnp.float32
    ).astype(o_ref.dtype)


# ---------------------------------------------------------------------------
# Kernel 2: the recurrence.  One grid step == t_chunk timesteps of one batch
# block; the hidden state is carried across sequence chunks in VMEM scratch.
# ---------------------------------------------------------------------------
def gru_recurrent_kernel(g_ref, wzr_ref, wh_ref, out_ref, h_scratch,
                         *, t_chunk, hp):
    # New batch block -> reset hidden state (GRU.init_hidden: zeros).
    @pl.when(pl.program_id(1) == 0)
    def _():
        h_scratch[...] = jnp.zeros_like(h_scratch)

    def step(t, h):
        g = g_ref[t].astype(jnp.float32)                     # (BB, 3*Hp) f32
        # z and r come from ONE fused (Hp, 2*Hp) bf16 recurrent matmul
        # (f32 accumulation on the MXU).
        zr = jax.nn.sigmoid(
            jnp.dot(h.astype(jnp.bfloat16), wzr_ref[...],
                    preferred_element_type=jnp.float32)
            + g[:, :2 * hp])
        z = zr[:, :hp]
        r = zr[:, hp:]
        # candidate: tanh((r*h) @ W_h + x_t @ W_x)  (x part precomputed in g)
        h_hat = jnp.tanh(
            jnp.dot((r * h).astype(jnp.bfloat16), wh_ref[...],
                    preferred_element_type=jnp.float32)
            + g[:, 2 * hp:])
        # h_t = (1 - z)*h + z*h_hat  ==  h + z*(h_hat - h)
        h_new = h + z * (h_hat - h)
        out_ref[t] = h_new.astype(out_ref.dtype)
        return h_new

    # Bounded unroll: keeps LLO scheduling visibility without blowing vregs.
    h = jax.lax.fori_loop(0, t_chunk, step, h_scratch[...], unroll=2)
    h_scratch[...] = h


# ---------------------------------------------------------------------------
# One-time weight re-packing (outside the hot path).
# ---------------------------------------------------------------------------
def pack_gru_weights(W_z, W_r, W, n_in, n_hidden):
    hp = _round_up(n_hidden, 128)

    # Split the concatenated-input weights (matches the torch.cat orders).
    wz_x, wz_h = W_z[:n_in], W_z[n_in:]        # cat(x_t, h_t1)
    wr_x, wr_h = W_r[:n_in], W_r[n_in:]
    w_h, w_x = W[:n_hidden], W[n_hidden:]      # cat(r_t*h_t1, x_t)

    def pad2(w, rows, cols):
        return jnp.pad(w, ((0, rows - w.shape[0]), (0, cols - w.shape[1])))

    # x-side weights fused along N: [z | r | candidate], each padded to Hp.
    # Kept f32: the x-projection is throughput-amortized, gates round to bf16
    # only at the store.
    w_x_packed = jnp.concatenate(
        [pad2(wz_x, n_in, hp), pad2(wr_x, n_in, hp), pad2(w_x, n_in, hp)],
        axis=1).astype(jnp.float32)                        # (n_in, 3*Hp)
    # h-side z/r weights fused along N; bf16 (MXU-native) -> half the weight
    # DMA / VMEM footprint on the serial critical path.
    w_zr_h = jnp.concatenate(
        [pad2(wz_h, hp, hp), pad2(wr_h, hp, hp)],
        axis=1).astype(jnp.bfloat16)                       # (Hp, 2*Hp)
    w_h_p = pad2(w_h, hp, hp).astype(jnp.bfloat16)         # (Hp, Hp)
    return w_x_packed, w_zr_h, w_h_p, hp


def _pick_t_chunk(S, bb, hp, out_itemsize, budget_bytes=12 << 20,
                  max_chunk=32):
    """Largest t_chunk whose double-buffered (in + out) blocks fit the budget."""
    per_step = 2 * bb * 3 * hp * 2 + 2 * bb * hp * out_itemsize
    t = max(1, int(budget_bytes // max(per_step, 1)))
    return int(min(t, max_chunk, S))


# ---------------------------------------------------------------------------
# Forward wrapper.
# ---------------------------------------------------------------------------
def gru_forward(x, packed_weights, n_in, n_hidden, batch_first=True):
    w_x_packed, w_zr_h, w_h_p, hp = packed_weights
    out_dtype = x.dtype
    out_isize = jnp.dtype(out_dtype).itemsize

    if batch_first:
        x = jnp.transpose(x, (1, 0, 2))                    # -> (S, B, n_in)
    S, B, _ = x.shape

    # Batch blocking: 1 block if the batch fits in 8 rows, otherwise 2 blocks
    # so the "parallel" grid axis can shard across v7x's 2 TensorCores
    # (neutral on v5e/v6e).
    bp = _round_up(B, 8)
    if bp <= 8:
        nb, bb = 1, bp
    else:
        nb = 2
        bb = _round_up(pl.cdiv(bp, 2), 16)     # bf16-safe sublane multiple
    bp_tot = nb * bb

    # Budget-driven sequence chunking; pad S up to a multiple of t_chunk.
    t_chunk = _pick_t_chunk(S, bb, hp, out_isize)
    sp = _round_up(S, t_chunk)

    # Zero-pad.  Padded timesteps are appended AFTER the real sequence, so the
    # carried h for real outputs is unaffected; padded batch rows / hidden
    # lanes stay zero and are sliced off at the end.
    x_p = jnp.pad(x.astype(jnp.float32),
                  ((0, sp - S), (0, bp_tot - B), (0, 0)))
    x_flat = x_p.reshape(sp * bp_tot, n_in)
    M = sp * bp_tot

    # Row-tile the x projection: largest power-of-two block <= 512 rows that
    # divides M (M is always a multiple of 8).
    mb = next(c for c in (512, 256, 128, 64, 32, 16, 8) if M % c == 0)

    # 1) Sequence-wide x projection, tiled + pipelined, gates staged in bf16.
    gates = pl.pallas_call(
        xproj_kernel,
        out_shape=jax.ShapeDtypeStruct((M, 3 * hp), jnp.bfloat16),
        grid_spec=pltpu.PrefetchScalarGridSpec(
            num_scalar_prefetch=0,
            grid=(M // mb,),
            in_specs=[
                pl.BlockSpec((mb, n_in), lambda i: (i, 0)),
                pl.BlockSpec((n_in, 3 * hp), lambda i: (0, 0)),
            ],
            out_specs=pl.BlockSpec((mb, 3 * hp), lambda i: (i, 0)),
        ),
        compiler_params=pltpu.CompilerParams(
            dimension_semantics=("parallel",),
            vmem_limit_bytes=48 * 1024 * 1024),
    )(x_flat, w_x_packed)
    gates = gates.reshape(sp, bp_tot, 3 * hp)

    cost = pl.CostEstimate(
        flops=int(6 * sp * bp_tot * hp * hp),
        transcendentals=int(3 * sp * bp_tot * hp),
        bytes_accessed=int(gates.size * 2
                           + sp * bp_tot * hp * out_isize
                           + (w_zr_h.size + w_h_p.size) * 2),
    )

    # 2) Chunked recurrence (hidden carried in VMEM scratch), batch-parallel.
    out_p = pl.pallas_call(
        functools.partial(gru_recurrent_kernel, t_chunk=t_chunk, hp=hp),
        out_shape=jax.ShapeDtypeStruct((sp, bp_tot, hp), out_dtype),
        grid_spec=pltpu.PrefetchScalarGridSpec(
            num_scalar_prefetch=0,
            grid=(nb, sp // t_chunk),
            in_specs=[
                pl.BlockSpec((t_chunk, bb, 3 * hp), lambda b, c: (c, b, 0)),
                pl.BlockSpec((hp, 2 * hp), lambda b, c: (0, 0)),
                pl.BlockSpec((hp, hp), lambda b, c: (0, 0)),
            ],
            out_specs=pl.BlockSpec((t_chunk, bb, hp), lambda b, c: (c, b, 0)),
            scratch_shapes=[pltpu.VMEM((bb, hp), jnp.float32)],
        ),
        compiler_params=pltpu.CompilerParams(
            dimension_semantics=("parallel", "arbitrary"),
            vmem_limit_bytes=48 * 1024 * 1024),
        cost_estimate=cost,
    )(gates, w_zr_h, w_h_p)

    # Strip padding: (S, B, n_hidden), matching torch.stack(output, 0).
    return out_p[:S, :B, :n_hidden]


# ---------------------------------------------------------------------------
# Pure-JAX reference mirroring the PyTorch forward exactly (f32).
# ---------------------------------------------------------------------------
def gru_reference(x, W_z, W_r, W, n_in, n_hidden, batch_first=True):
    if batch_first:
        x = jnp.transpose(x, (1, 0, 2))
    S, B, _ = x.shape
    h = jnp.zeros((B, n_hidden), x.dtype)
    outs = []
    for t in range(S):
        x_t = x[t]
        xt_ht1 = jnp.concatenate([x_t, h], axis=1)
        z_t = jax.nn.sigmoid(xt_ht1 @ W_z)
        r_t = jax.nn.sigmoid(xt_ht1 @ W_r)
        xr_ht1 = jnp.concatenate([r_t * h, x_t], axis=1)
        h_hat = jnp.tanh(xr_ht1 @ W)
        h = (1.0 - z_t) * h + z_t * h_hat
        outs.append(h)
    return jnp.stack(outs, 0)


if __name__ == "__main__":
    n_in, n_hidden = 8, 32
    batch, seq = 4, 8

    key = jax.random.PRNGKey(0)
    kx, kz, kr, kw = jax.random.split(key, 4)

    # Deterministic init: uniform(-1/sqrt(n_hidden), 1/sqrt(n_hidden)).
    std = 1.0 / math.sqrt(n_hidden)
    W_z = jax.random.uniform(kz, (n_in + n_hidden, n_hidden), jnp.float32,
                             -std, std)
    W_r = jax.random.uniform(kr, (n_in + n_hidden, n_hidden), jnp.float32,
                             -std, std)
    W = jax.random.uniform(kw, (n_in + n_hidden, n_hidden), jnp.float32,
                           -std, std)

    x = jax.random.normal(kx, (batch, seq, n_in), jnp.float32)  # batch_first

    packed = pack_gru_weights(W_z, W_r, W, n_in, n_hidden)  # one-time packing
    out = gru_forward(x, packed, n_in, n_hidden, batch_first=True)
    out = jax.block_until_ready(out)

    ref = gru_reference(x, W_z, W_r, W, n_in, n_hidden, batch_first=True)
    assert out.shape == (seq, batch, n_hidden)
    # bf16 MXU operands / bf16 gate staging -> looser tolerance vs. f32 ref.
    assert jnp.allclose(out, ref, atol=2e-2, rtol=2e-2), float(
        jnp.max(jnp.abs(out - ref)))

    print("KERNEL_OK")
</pallas_src>

<mosaic_0001>
module attributes {stable_mosaic.version = 11 : i64} {
  func.func @xproj_kernel(%arg0: i32, %arg1: memref<64x8xf32, #tpu.memory_space<vmem>>, %arg2: memref<8x384xf32, #tpu.memory_space<vmem>>, %arg3: memref<64x384xbf16, #tpu.memory_space<vmem>>) attributes {dimension_semantics = [#tpu.dimension_semantics<parallel>], iteration_bounds = array<i64: 1>, scalar_prefetch = 0 : i64, scratch_operands = 0 : i64, tpu.core_type = #tpu.core_type<tc>, window_params = [{transform_indices = @transform_0, window_bounds = array<i64: 64, 8>}, {pipeline_mode = #tpu.pipeline_mode<synchronous>, transform_indices = @transform_1, window_bounds = array<i64: 8, 384>}, {transform_indices = @transform_2, window_bounds = array<i64: 64, 384>}]} {
    %c0 = arith.constant 0 : index
    %c0_0 = arith.constant 0 : index
    %0 = vector.load %arg1[%c0, %c0_0] : memref<64x8xf32, #tpu.memory_space<vmem>>, vector<64x8xf32>
    %c0_1 = arith.constant 0 : index
    %c0_2 = arith.constant 0 : index
    %1 = vector.load %arg2[%c0_1, %c0_2] : memref<8x384xf32, #tpu.memory_space<vmem>>, vector<8x384xf32>
    %cst = arith.constant dense<0.000000e+00> : vector<64x384xf32>
    %2 = tpu.matmul %0, %1, %cst {dimension_numbers = #tpu.dot_dimension_numbers<[1], [0], [0], [1], [0, 0, 1, 1], [], []>} : vector<64x8xf32>, vector<8x384xf32>, vector<64x384xf32> -> vector<64x384xf32>
    %3 = arith.truncf %2 : vector<64x384xf32> to vector<64x384xbf16>
    %c0_3 = arith.constant 0 : index
    %c0_4 = arith.constant 0 : index
    %4 = vector.load %arg3[%c0_3, %c0_4] : memref<64x384xbf16, #tpu.memory_space<vmem>>, vector<64x384xbf16>
    tpu.vector_store %arg3[%c0_3, %c0_4], %3 {strides = array<i32>} : memref<64x384xbf16, #tpu.memory_space<vmem>>, vector<64x384xbf16>,
    return
  }
  func.func @transform_0(%arg0: i32) -> (i32, i32) {
    %c0_i32 = arith.constant 0 : i32
    %c0_i32_0 = arith.constant 0 : i32
    return %arg0, %c0_i32 : i32, i32
  }
  func.func @transform_1(%arg0: i32) -> (i32, i32) {
    %c0_i32 = arith.constant 0 : i32
    %c0_i32_0 = arith.constant 0 : i32
    %c0_i32_1 = arith.constant 0 : i32
    return %c0_i32, %c0_i32_0 : i32, i32
  }
  func.func @transform_2(%arg0: i32) -> (i32, i32) {
    %c0_i32 = arith.constant 0 : i32
    %c0_i32_0 = arith.constant 0 : i32
    return %arg0, %c0_i32 : i32, i32
  }
}

</mosaic_0001>

<bundles_post_ra>
// kernel: tpu_custom_call.1
= control target key start
LH: loop header
LB: loop body
LE: loop exit
PB: predicated region body
PF: predicated region fallthrough
CT: control target
= control target key end

     0   :  { %vm23_vm0 = vcmask 64512   ;;  %s355_s0 = inlined_call_operand.vmem [shape: f32[64,8], index: 0, kind: input, shape index: {}]   ;;  %s356_s1 = inlined_call_operand.vmem [shape: f32[8,384], index: 1, kind: input, shape index: {}]   ;;  %s357_s2 = inlined_call_operand.hbm [shape: bf16[64,384], index: 2, kind: output, shape index: {}]  }
   0x1   :  { %v20_v0 = vld [vmem:[%s356_s1] sm:$0xff]  ;;  %v22_v1 = vld [vmem:[%s356_s1 + $0x10] sm:$0xff]  ;;  %v21_v3 = vld [vmem:[%s356_s1 + $0x8] sm:$0xff] }
   0x2   :  { %v18_v2 = vld [vmem:[%s355_s0 + $0x30] sm:$0xff]  ;;  %245 = vmatpush.msra.mxu3 %v20_v0  ;;  %145 = vmatpush.msra.mxu2 %v22_v1  ;;  %v12_v4 = vld [vmem:[%s355_s0] sm:$0xff] }
   0x3   :  { %227 = vmatmul.msk.f32.vlgmr.msra.gmra.mxu3 %vm23_vm0, %v18_v2  ;;  %237 = vmatmul.msk.f32.vlgmr.msra.gmra.mxu2 %vm23_vm0, %v12_v4 }
   0x4   :  { %246 = vmatpush.msrb.mxu3 %v21_v3  ;;  %63 = vmatpush.msra.mxu0 %v20_v0 }
   0x5   :  { %7 = vsyncpa [#allocation3], 0  ;;  %104 = vmatpush.msra.mxu1 %v21_v3  ;;  %221 = vmatmul.msk.f32.vlgmr.msra.gmra.mxu0 %vm23_vm0, %v12_v4  ;;  %v19_v5 = vld [vmem:[%s355_s0 + $0x38] sm:$0xff]  ;;  %v13_v6 = vld [vmem:[%s355_s0 + $0x8] sm:$0xff]  ;;  %s209_s5 = sshll.u32 %s357_s2, 4  ;;  %s278_s6 = smov 192   ;;  %s210_s5 = int_to_ptr.hbm [resolvable:$true] %s209_s5 }
   0x6   :  { %229 = vmatmul.msk.f32.vlgmr.msra.gmra.mxu1 %vm23_vm0, %v12_v4  ;;  %247 = vmatpush.msra.mxu3 %v22_v1  ;;  %v14_v7 = vld [vmem:[%s355_s0 + $0x10] sm:$0xff]  ;;  %v15_v8 = vld [vmem:[%s355_s0 + $0x18] sm:$0xff]  ;;  %v16_v9 = vld [vmem:[%s355_s0 + $0x20] sm:$0xff]  ;;  %s279_s7 = smov 12  }
   0x7   :  { %v17_v10 = vld [vmem:[%s355_s0 + $0x28] sm:$0xff]  ;;  %s277_s0 = smov [#allocation2]  }
   0x8   :  { %s207_s30 = sshll.u32 %s277_s0, 4  ;;  %s208_s30 = int_to_ptr.vmem [resolvable:$true] %s207_s30 }
   0xb   :  { %228 = vmatmul.msk.f32.gmra.mxu3 %vm23_vm0, %v19_v5  ;;  %238 = vmatmul.msk.f32.gmra.mxu2 %vm23_vm0, %v13_v6 }
   0xd   :  { %222 = vmatmul.msk.f32.gmra.mxu0 %vm23_vm0, %v13_v6 }
   0xe   :  { %230 = vmatmul.msk.f32.gmra.mxu1 %vm23_vm0, %v13_v6 }
  0x13   :  { %235 = vmatmul.msk.f32.vlgmr.msrb.gmra.mxu3 %vm23_vm0, %v18_v2  ;;  %239 = vmatmul.msk.f32.gmra.mxu2 %vm23_vm0, %v14_v7 }
  0x15   :  { %223 = vmatmul.msk.f32.gmra.mxu0 %vm23_vm0, %v14_v7 }
  0x16   :  { %231 = vmatmul.msk.f32.gmra.mxu1 %vm23_vm0, %v14_v7 }
  0x1b   :  { %236 = vmatmul.msk.f32.gmra.mxu3 %vm23_vm0, %v19_v5  ;;  %240 = vmatmul.msk.f32.gmra.mxu2 %vm23_vm0, %v15_v8 }
  0x1d   :  { %224 = vmatmul.msk.f32.gmra.mxu0 %vm23_vm0, %v15_v8 }
  0x1e   :  { %232 = vmatmul.msk.f32.gmra.mxu1 %vm23_vm0, %v15_v8 }
  0x23   :  { %241 = vmatmul.msk.f32.gmra.mxu2 %vm23_vm0, %v16_v9  ;;  %243 = vmatmul.msk.f32.vlgmr.msra.gmra.mxu3 %vm23_vm0, %v18_v2 }
  0x25   :  { %225 = vmatmul.msk.f32.gmra.mxu0 %vm23_vm0, %v16_v9 }
  0x26   :  { %233 = vmatmul.msk.f32.gmra.mxu1 %vm23_vm0, %v16_v9 }
  0x2b   :  { %242 = vmatmul.msk.f32.gmra.mxu2 %vm23_vm0, %v17_v10  ;;  %244 = vmatmul.msk.f32.gmra.mxu3 %vm23_vm0, %v19_v5 }
  0x2d   :  { %226 = vmatmul.msk.f32.gmra.mxu0 %vm23_vm0, %v17_v10 }
  0x2e   :  { %234 = vmatmul.msk.f32.gmra.mxu1 %vm23_vm0, %v17_v10 }
  0x82   :  { %v65_v11 = vpop.f32.mrf.mxu0 }
  0x83   :  { %v106_v12 = vpop.f32.mrf.mxu1 }
  0x84   :  { %v171_v13 = vpack.c.bf16 %v106_v12, %v65_v11 }
  0x86   :  { %v83_v14 = vpop.f32.mrf.mxu3  ;;  %187 = vst [vmem:[#allocation2] sm:$0xff] %v171_v13  ;;  %v147_v15 = vpop.f32.mrf.mxu2 }
  0x87   :  { %v172_v16 = vpack.c.bf16 %v147_v15, %v147_v15 }
  0x89   :  { %188 = vst [vmem:[#allocation2 + $0x8] sm:$0xf] %v172_v16 }
  0x8a   :  { %v68_v17 = vpop.f32.mrf.mxu0 }
  0x8b   :  { %v109_v18 = vpop.f32.mrf.mxu1 }
  0x8c   :  { %v173_v19 = vpack.c.bf16 %v109_v18, %v68_v17 }
  0x8e   :  { %v86_v20 = vpop.f32.mrf.mxu3  ;;  %189 = vst [vmem:[#allocation2 + $0xc] sm:$0xff] %v173_v19  ;;  %v150_v21 = vpop.f32.mrf.mxu2 }
  0x8f   :  { %v174_v22 = vpack.c.bf16 %v150_v21, %v150_v21 }
  0x91   :  { %190 = vst [vmem:[#allocation2 + $0x14] sm:$0xf] %v174_v22 }
  0x92   :  { %v71_v23 = vpop.f32.mrf.mxu0 }
  0x93   :  { %v112_v24 = vpop.f32.mrf.mxu1 }
  0x94   :  { %v175_v25 = vpack.c.bf16 %v112_v24, %v71_v23 }
  0x96   :  { %191 = vst [vmem:[#allocation2 + $0x18] sm:$0xff] %v175_v25  ;;  %v124_v26 = vpop.f32.mrf.mxu3  ;;  %v153_v27 = vpop.f32.mrf.mxu2 }
  0x97   :  { %v183_v28 = vpack.c.bf16 %v124_v26, %v83_v14  ;;  %v176_v29 = vpack.c.bf16 %v153_v27, %v153_v27 }
  0x99   :  { %199 = vst [vmem:[#allocation2 + $0x48] sm:$0xff] %v183_v28 }
  0x9a   :  { %192 = vst [vmem:[#allocation2 + $0x20] sm:$0xf] %v176_v29  ;;  %v74_v30 = vpop.f32.mrf.mxu0 }
  0x9b   :  { %v115_v31 = vpop.f32.mrf.mxu1 }
  0x9c   :  { %v177_v32 = vpack.c.bf16 %v115_v31, %v74_v30 }
  0x9e   :  { %193 = vst [vmem:[#allocation2 + $0x24] sm:$0xff] %v177_v32  ;;  %v127_v33 = vpop.f32.mrf.mxu3  ;;  %v156_v34 = vpop.f32.mrf.mxu2 }
  0x9f   :  { %v185_v35 = vpack.c.bf16 %v127_v33, %v86_v20  ;;  %v178_v36 = vpack.c.bf16 %v156_v34, %v156_v34 }
  0xa1   :  { %201 = vst [vmem:[#allocation2 + $0x54] sm:$0xff] %v185_v35 }
  0xa2   :  { %194 = vst [vmem:[#allocation2 + $0x2c] sm:$0xf] %v178_v36  ;;  %v77_v37 = vpop.f32.mrf.mxu0 }
  0xa3   :  { %v118_v38 = vpop.f32.mrf.mxu1 }
  0xa4   :  { %v179_v39 = vpack.c.bf16 %v118_v38, %v77_v37 }
  0xa6   :  { %195 = vst [vmem:[#allocation2 + $0x30] sm:$0xff] %v179_v39  ;;  %v159_v40 = vpop.f32.mrf.mxu2  ;;  %v165_v41 = vpop.f32.mrf.mxu3 }
  0xa7   :  { %v180_v42 = vpack.c.bf16 %v159_v40, %v159_v40  ;;  %v184_v43 = vpack.c.bf16 %v165_v41, %v165_v41 }
  0xa9   :  { %196 = vst [vmem:[#allocation2 + $0x38] sm:$0xf] %v180_v42 }
  0xaa   :  { %200 = vst [vmem:[#allocation2 + $0x50] sm:$0xf] %v184_v43  ;;  %v80_v44 = vpop.f32.mrf.mxu0 }
  0xab   :  { %v121_v45 = vpop.f32.mrf.mxu1 }
  0xac   :  { %v181_v46 = vpack.c.bf16 %v121_v45, %v80_v44 }
  0xae   :  { %197 = vst [vmem:[#allocation2 + $0x3c] sm:$0xff] %v181_v46  ;;  %v162_v47 = vpop.f32.mrf.mxu2  ;;  %v168_v48 = vpop.f32.mrf.mxu3 }
  0xaf   :  { %v182_v49 = vpack.c.bf16 %v162_v47, %v162_v47  ;;  %v186_v50 = vpack.c.bf16 %v168_v48, %v168_v48 }
  0xb1   :  { %198 = vst [vmem:[#allocation2 + $0x44] sm:$0xf] %v182_v49 }
  0xb2   :  { %202 = vst [vmem:[#allocation2 + $0x5c] sm:$0xf] %v186_v50 }
  0xb3   :  { %215 = dma.vmem_to_hbm [thread:$0]  %s208_s30, 1536, %s210_s5, [#allocation3], %s278_s6, %s278_s6, %s279_s7  }
  0xb4   :  { %275 = dma.done.wait [#allocation3], 1536  }
  0xb5   :  { %276 = vsyncadd [#allocation3], 4294965760 }
  0xb6   :  { %220 = vsyncpa [#allocation3], 1 }

</bundles_post_ra>
